<compile_context>
chip_gen: v6e
topology: v6e:2x2x1
jax: 0.10.0
libtpu: 0.0.40
codegen_flags: <defaults>
</compile_context>

<pallas_src>
import jax
import jax.numpy as jnp
from jax.experimental import pallas as pl
from jax.experimental.pallas import tpu as pltpu


def _fused_conv1x1_kernel(lvl_ref, x_ref, w_ref, b_ref, o_ref):
    # lvl_ref: (T,) int32 in SMEM (scalar prefetch; consumed by index_maps only)
    # x_ref:   (Cin, thw)   channel-major tile, spatial on the lane axis
    # w_ref:   (Cout, Cin)  weight of the level this tile belongs to (f32)
    # b_ref:   (Cout, 1)    bias of that level (f32)
    # o_ref:   (Cout, thw)  output tile, same dtype as the input feature map
    del lvl_ref
    x = x_ref[...].astype(jnp.float32)
    y = jnp.dot(w_ref[...], x, preferred_element_type=jnp.float32)  # MXU
    o_ref[...] = (y + b_ref[...]).astype(o_ref.dtype)               # sublane-bcast bias


def _round_up(x, m):
    return ((x + m - 1) // m) * m


def fused_conv1x1_levels(feats, weights, biases, *, tile_cap=8192):
    """Per-level 1x1 conv (stride 1, pad 0) + bias on a list of NCHW feature
    maps, computed with a single fused pallas_call (one launch for all levels)."""
    L = len(feats)
    N, C = feats[0].shape[:2]
    dtype = feats[0].dtype
    for f in feats:
        assert f.shape[0] == N and f.shape[1] == C and f.dtype == dtype

    hw = [f.shape[2] * f.shape[3] for f in feats]

    # Lane tile: multiple of 128 (unmasked full-lane stores), large enough to
    # amortise the ~0.35us per-grid-step overhead, capped by tile_cap.
    thw = max(128, min(_round_up(tile_cap, 128), _round_up(max(hw), 128)))
    tiles = [pl.cdiv(h, thw) for h in hw]
    T = sum(tiles)  # >= 4 tiles -> grid always has multiple blocks (v7x megacore)

    # Pack all levels along the spatial (lane) axis, each padded to a multiple
    # of thw so every tile lies entirely inside one level.
    xs = []
    for f, h, t in zip(feats, hw, tiles):
        x = f.reshape(N, C, h)                     # free view (HW contiguous)
        pad = t * thw - h
        if pad:
            x = jnp.pad(x, ((0, 0), (0, 0), (0, pad)))
        xs.append(x)
    x_packed = jnp.concatenate(xs, axis=-1) if L > 1 else xs[0]   # (N, C, T*thw)

    # Per-tile level id (scalar-prefetched to SMEM; drives weight/bias blocks).
    level_id = jnp.asarray(
        [i for i, t in enumerate(tiles) for _ in range(t)], dtype=jnp.int32)

    # Parameters: resident (tiny), compute always in f32.
    w_all = jnp.stack([w.reshape(C, C) for w in weights]).astype(jnp.float32)
    b_all = jnp.stack([b.reshape(C, 1) for b in biases]).astype(jnp.float32)

    bytes_el = int(dtype.itemsize)
    cost = pl.CostEstimate(
        flops=2 * N * C * C * T * thw,
        transcendentals=0,
        bytes_accessed=bytes_el * 2 * N * C * T * thw + 4 * (L * C * C + L * C),
    )

    out_packed = pl.pallas_call(
        _fused_conv1x1_kernel,
        out_shape=jax.ShapeDtypeStruct((N, C, T * thw), dtype),
        grid_spec=pltpu.PrefetchScalarGridSpec(
            num_scalar_prefetch=1,
            grid=(N, T),
            in_specs=[
                pl.BlockSpec((pl.Squeezed(), C, thw),
                             lambda n, j, lvl: (n, 0, j)),
                pl.BlockSpec((pl.Squeezed(), C, C),
                             lambda n, j, lvl: (lvl[j], 0, 0)),
                pl.BlockSpec((pl.Squeezed(), C, 1),
                             lambda n, j, lvl: (lvl[j], 0, 0)),
            ],
            out_specs=pl.BlockSpec((pl.Squeezed(), C, thw),
                                   lambda n, j, lvl: (n, 0, j)),
        ),
        compiler_params=pltpu.CompilerParams(
            dimension_semantics=("parallel", "arbitrary")),
        cost_estimate=cost,
    )(level_id, x_packed, w_all, b_all)

    # Slice each level back out of the packed output and restore NCHW.
    outs, off = [], 0
    for f, h, t in zip(feats, hw, tiles):
        n_, c_, H, W = f.shape
        outs.append(out_packed[:, :, off:off + h].reshape(n_, c_, H, W))
        off += t * thw
    return outs


def init_fpem_v2_params(out_channels, dtype=jnp.float32):
    """FPEM_v2 parameters: four zero_module'd Conv2d(planes, planes, 1)
    (weight AND bias zeroed).  Adapter params are dead code (result discarded)."""
    planes = out_channels
    linear = [
        dict(weight=jnp.zeros((planes, planes, 1, 1), dtype),
             bias=jnp.zeros((planes,), dtype))
        for _ in range(4)
    ]
    return dict(linear=linear)


def fpem_v2_forward(params, f1, f2, f3, f4, *, tile_cap=8192):
    # Conv_Adapter.forward discards its computed result and returns its input
    # unchanged, so adapter[i](f_i) == f_i; the dead fc1->GELU->fc2 branch is
    # intentionally not executed (forward-pass output is identical).
    feats = (f1, f2, f3, f4)
    weights = [p["weight"] for p in params["linear"]]
    biases = [p["bias"] for p in params["linear"]]
    return fused_conv1x1_levels(feats, weights, biases, tile_cap=tile_cap)


if __name__ == "__main__":
    # FPEM_v2(in_channels=8, out_channels=8): planes = out_channels = 8.
    planes = 8
    N = 2
    spatial = [(32, 32), (16, 16), (8, 8), (4, 4)]   # typical FPN pyramid sizes

    key = jax.random.PRNGKey(0)
    keys = jax.random.split(key, 12)
    feats = [jax.random.normal(keys[i], (N, planes, h, w), dtype=jnp.float32)
             for i, (h, w) in enumerate(spatial)]
    f1, f2, f3, f4 = feats

    # --- FPEM_v2 forward with its actual (zero) initialization -------------
    params = init_fpem_v2_params(planes)
    outs = jax.block_until_ready(fpem_v2_forward(params, f1, f2, f3, f4))
    for f, o in zip(feats, outs):
        assert o.shape == f.shape and o.dtype == f.dtype
        # zero_module'd 1x1 conv (weight=0, bias=0) -> exactly zeros
        assert float(jnp.max(jnp.abs(o))) == 0.0

    # --- sanity check of the fused kernel with non-zero per-level params ---
    ws = [0.1 * jax.random.normal(keys[4 + i], (planes, planes, 1, 1), jnp.float32)
          for i in range(4)]
    bs = [0.1 * jax.random.normal(keys[8 + i], (planes,), jnp.float32)
          for i in range(4)]
    ys = jax.block_until_ready(fused_conv1x1_levels(feats, ws, bs))
    for f, w, b, y in zip(feats, ws, bs, ys):
        ref = (jnp.einsum("nchw,oc->nohw", f, w.reshape(planes, planes))
               + b[None, :, None, None])
        assert float(jnp.max(jnp.abs(y - ref))) < 1e-4

    # --- output dtype follows input dtype (bf16 I/O, zero params -> zeros) --
    feats_bf16 = [f.astype(jnp.bfloat16) for f in feats]
    outs_bf16 = jax.block_until_ready(fpem_v2_forward(params, *feats_bf16))
    for f, o in zip(feats_bf16, outs_bf16):
        assert o.dtype == jnp.bfloat16 and o.shape == f.shape
        assert float(jnp.max(jnp.abs(o.astype(jnp.float32)))) == 0.0

    print("KERNEL_OK")
</pallas_src>

<mosaic_0001>
module attributes {stable_mosaic.version = 11 : i64} {
  func.func @_fused_conv1x1_kernel(%arg0: i32, %arg1: i32, %arg2: memref<4xi32, #tpu.memory_space<smem>>, %arg3: memref<1x8x1024xf32, #tpu.memory_space<vmem>>, %arg4: memref<1x8x8xf32, #tpu.memory_space<vmem>>, %arg5: memref<1x8x1xf32, #tpu.memory_space<vmem>>, %arg6: memref<1x8x1024xf32, #tpu.memory_space<vmem>>) attributes {dimension_semantics = [#tpu.dimension_semantics<parallel>, #tpu.dimension_semantics<arbitrary>], iteration_bounds = array<i64: 2, 4>, scalar_prefetch = 1 : i64, scratch_operands = 0 : i64, tpu.core_type = #tpu.core_type<tc>, window_params = [{transform_indices = @transform_0, window_bounds = array<i64: 1, 8, 1024>}, {transform_indices = @transform_1, window_bounds = array<i64: 1, 8, 8>}, {transform_indices = @transform_2, window_bounds = array<i64: 1, 8, 1>}, {transform_indices = @transform_3, window_bounds = array<i64: 1, 8, 1024>}]} {
    %c0 = arith.constant 0 : index
    %c0_0 = arith.constant 0 : index
    %c0_1 = arith.constant 0 : index
    %0 = vector.load %arg3[%c0, %c0_0, %c0_1] : memref<1x8x1024xf32, #tpu.memory_space<vmem>>, vector<1x8x1024xf32>
    %1 = vector.shape_cast %0 : vector<1x8x1024xf32> to vector<8x1024xf32>
    %c0_2 = arith.constant 0 : index
    %c0_3 = arith.constant 0 : index
    %c0_4 = arith.constant 0 : index
    %2 = vector.load %arg4[%c0_2, %c0_3, %c0_4] : memref<1x8x8xf32, #tpu.memory_space<vmem>>, vector<1x8x8xf32>
    %3 = vector.shape_cast %2 : vector<1x8x8xf32> to vector<8x8xf32>
    %cst = arith.constant dense<0.000000e+00> : vector<8x1024xf32>
    %4 = tpu.matmul %3, %1, %cst {dimension_numbers = #tpu.dot_dimension_numbers<[1], [0], [0], [1], [0, 0, 1, 1], [], []>} : vector<8x8xf32>, vector<8x1024xf32>, vector<8x1024xf32> -> vector<8x1024xf32>
    %c0_5 = arith.constant 0 : index
    %c0_6 = arith.constant 0 : index
    %c0_7 = arith.constant 0 : index
    %5 = vector.load %arg5[%c0_5, %c0_6, %c0_7] : memref<1x8x1xf32, #tpu.memory_space<vmem>>, vector<1x8x1xf32>
    %6 = vector.shape_cast %5 : vector<1x8x1xf32> to vector<8x1xf32>
    %7 = vector.broadcast %6 : vector<8x1xf32> to vector<8x1024xf32>
    %8 = arith.addf %4, %7 : vector<8x1024xf32>
    %c0_8 = arith.constant 0 : index
    %c0_9 = arith.constant 0 : index
    %c0_10 = arith.constant 0 : index
    %9 = vector.load %arg6[%c0_8, %c0_9, %c0_10] : memref<1x8x1024xf32, #tpu.memory_space<vmem>>, vector<1x8x1024xf32>
    %10 = vector.shape_cast %9 : vector<1x8x1024xf32> to vector<8x1024xf32>
    %11 = vector.shape_cast %8 : vector<8x1024xf32> to vector<1x8x1024xf32>
    tpu.vector_store %arg6[%c0_8, %c0_9, %c0_10], %11 {strides = array<i32>} : memref<1x8x1024xf32, #tpu.memory_space<vmem>>, vector<1x8x1024xf32>,
    return
  }
  func.func @transform_0(%arg0: i32, %arg1: i32, %arg2: memref<4xi32, #tpu.memory_space<smem>>) -> (i32, i32, i32) {
    %c0_i32 = arith.constant 0 : i32
    %c0_i32_0 = arith.constant 0 : i32
    return %arg0, %c0_i32, %arg1 : i32, i32, i32
  }
  func.func @transform_1(%arg0: i32, %arg1: i32, %arg2: memref<4xi32, #tpu.memory_space<smem>>) -> (i32, i32, i32) {
    %0 = arith.index_cast %arg1 : i32 to index
    %1 = memref.load %arg2[%0] : memref<4xi32, #tpu.memory_space<smem>>
    %c0_i32 = arith.constant 0 : i32
    %c0_i32_0 = arith.constant 0 : i32
    %c0_i32_1 = arith.constant 0 : i32
    return %1, %c0_i32, %c0_i32_0 : i32, i32, i32
  }
  func.func @transform_2(%arg0: i32, %arg1: i32, %arg2: memref<4xi32, #tpu.memory_space<smem>>) -> (i32, i32, i32) {
    %0 = arith.index_cast %arg1 : i32 to index
    %1 = memref.load %arg2[%0] : memref<4xi32, #tpu.memory_space<smem>>
    %c0_i32 = arith.constant 0 : i32
    %c0_i32_0 = arith.constant 0 : i32
    %c0_i32_1 = arith.constant 0 : i32
    return %1, %c0_i32, %c0_i32_0 : i32, i32, i32
  }
  func.func @transform_3(%arg0: i32, %arg1: i32, %arg2: memref<4xi32, #tpu.memory_space<smem>>) -> (i32, i32, i32) {
    %c0_i32 = arith.constant 0 : i32
    %c0_i32_0 = arith.constant 0 : i32
    return %arg0, %c0_i32, %arg1 : i32, i32, i32
  }
}

</mosaic_0001>

<bundles_post_ra>
// kernel: tpu_custom_call.1
= control target key start
LH: loop header
LB: loop body
LE: loop exit
PB: predicated region body
PF: predicated region fallthrough
CT: control target
= control target key end

     0   :  { %s1167_s0 = inlined_call_operand.vmem [shape: s32[4], index: 0, kind: input, shape index: {}]   ;;  %s1168_s1 = inlined_call_operand.hbm [shape: f32[2,8,4096], index: 1, kind: input, shape index: {}]   ;;  %s1169_s2 = inlined_call_operand.vmem [shape: f32[4,8,8], index: 2, kind: input, shape index: {}]   ;;  %s1170_s3 = inlined_call_operand.vmem [shape: f32[4,8,1], index: 3, kind: input, shape index: {}]   ;;  %s1171_s4 = inlined_call_operand.hbm [shape: f32[2,8,4096], index: 4, kind: output, shape index: {}]  }
   0x1   :  { %s9_s17 = sshll.u32 %s1167_s0, 4  ;;  %s10_s17 = int_to_ptr.vmem [resolvable:$true] %s9_s17 }
   0x2   :  { %s806_s18 = scalar_lea.vmem %s10_s17, 16  ;;  %p811_p1 = scmp.lt.s32.totalorder %s10_s17, %s10_s17 }
   0x3   :  { %p807_p0 = scmp.ne.s32.totalorder %s10_s17, %s806_s18  ;;  %p812_p2 = scmp.lt.s32.totalorder %s806_s18, %s806_s18 }
   0x5   :  { %p813_p3 = por %p812_p2, %p811_p1 }
   0x7   :  { %p814_p4 = pnand %p813_p3, %p807_p0 }
   0x9   :  { %817 = shalt.err (!%p814_p4)  }
   0xa   :  { %s946_s19 = smov [#allocation3]  }
   0xb   :  { %12 = dma.vmem_to_smem %s10_s17, 16, %s946_s19, [#allocation2] }
   0xc   :  { %904 = dma.done.wait [#allocation2], 16 }
   0xd   :  { %905 = vsyncadd [#allocation2], 4294967280 }
   0xe   :  { %14 = sfence }
   0xf   :  { %15 = vsyncpa [#allocation5], 0 }
  0x10   :  { %17 = vsyncpa [#allocation5 + $0x1], 0 }
  0x11   :  { %18 = vsyncpa [#allocation6], 0 }
  0x12   :  { %20 = vsyncpa [#allocation6 + $0x1], 0  ;;  %s979_s20 = smov 0   ;;  %s981_s0 = smov 0  }
  0x13   :  { %s983_s21 = smov 0   ;;  %s985_s22 = smov 0  }
  0x14   :  { %s987_s23 = smov 0   ;;  %s989_s24 = smov 0  }
  0x15   :  { %s991_s25 = smov 0   ;;  %s993_s26 = smov 0  }
  0x16 LB: > { %s701_s27 = sadd.s32 4294967295, %s944_s26   ;;  %s702_s28 = sadd.s32 4294967294, %s944_s26   ;;  %s944_s26 = sphi %s993_s26, %s26_s26   ;;  %s940_s25 = sphi %s991_s25, %s1187_s25   ;;  %s936_s24 = sphi %s989_s24, %s1186_s24   ;;  %s932_s23 = sphi %s987_s23, %s1185_s23   ;;  %s928_s22 = sphi %s985_s22, %s1184_s22   ;;  %s924_s21 = sphi %s983_s21, %s1183_s21   ;;  %s920_s0 = sphi %s981_s0, %s1182_s0   ;;  %s916_s20 = sphi %s979_s20, %s1181_s20  }
  0x17   : > { %s35_s29 = sadd.s32 1, %s936_s24  ;;  %s38_s30 = sadd.s32 1, %s940_s25 }
  0x18   : > { %p36_p5 = scmp.ge.s32.totalorder %s35_s29, 4  ;;  %s47_s5 = sadd.s32 1, %s924_s21 }
  0x19   : > { %p54_p6 = scmp.ne.s32.totalorder %s924_s21, %s920_s0  ;;  %p55_p7 = scmp.eq.s32.totalorder %s944_s26, 0 }
  0x1a   : > { %s1189_s29 = smov (%p36_p5, %s35_s29), 0  ;;  %s1191_s30 = smov (!%p36_p5, %s38_s30), %s940_s25 }
  0x1b   : > { %s43_s6 = ssub.s32 %s936_s24, %s1189_s29  ;;  %p1032_p8 = por %p55_p7, %p54_p6 }
  0x1c   : > { %p40_p9 = scmp.ge.s32.totalorder %s1191_s30, 2  ;;  %p60_p10 = scmp.ne.s32.totalorder %s920_s0, %s916_s20 }
  0x1d   : > { %p61_p11 = scmp.eq.s32.totalorder %s701_s27, 0  ;;  %p142_p12 = scmp.eq.s32.totalorder %s701_s27, 7 }
  0x1e   : > { %s1193_s30 = smov (%p40_p9, %s1191_s30), 0  ;;  %p148_p1 = scmp.eq.s32.totalorder %s702_s28, 7 }
  0x1f   : > { %1174 = sst [smem:[#allocation11_spill]] %s1193_s30  ;;  %p1040_p13 = por %p61_p11, %p60_p10 }
  0x20   : > { %p1044_p0 = por %p142_p12, %p54_p6  ;;  %s42_s10 = ssub.s32 %s940_s25, %s1193_s30 }
  0x21   : > { %s44_s11 = sor.u32 %s43_s6, %s42_s10  ;;  %p1050_p3 = por %p148_p1, %p60_p10 }
  0x22   : > { %p45_p2 = scmp.eq.s32.totalorder %s44_s11, 0  ;;  %p736_p4 = scmp.lt.s32.totalorder %s944_s26, 8 }
  0x23   : > { %s1177_s12 = scalar_select %p1050_p3, 1, 0 }
  0x24   : > { %s168_s13 = sand.u32 1, %s924_s21   ;;  %s706_s16 = sshll.u32 %s936_s24, 3 }
  0x25   : > { %s1057_s14 = scalar_select %p45_p2, %s924_s21, %s47_s5  }
  0x26   : > { %s705_s15 = sshll.u32 %s168_s13, 6  ;;  %s707_s17 = sshll.u32 %s940_s25, 5 }
  0x27   : > { %s172_s18 = scalar_lea.vmem [#allocation4], %s705_s15  ;;  %s178_s27 = sadd.s32 %s707_s17, %s706_s16 }
  0x28   : > { %s182_s19 = sshll.u32 %s172_s18, 4  ;;  %s708_s28 = sshll.u32 %s178_s27, 7  ;;  %s183_s19 = int_to_ptr.vmem [resolvable:$true] %s182_s19 }
  0x29   : > { %p1063_p5 = pnand %p736_p4, %p1032_p8  ;;  %s180_s30 = scalar_lea.hbm %s1168_s1, %s708_s28 }
  0x2a   : > { %p709_p6 = scmp.ge.s32.totalorder %s944_s26, 1  ;;  %p205_p7 = scmp.lt.s32.totalorder %s944_s26, 9 }
  0x2b   : > { %s169_s5 = scalar_lea.sflag [#allocation5], %s168_s13  ;;  %p820_p9 = pneg %p1063_p5 }
  0x2c   : > { %s831_s15 = scalar_lea.vmem %s183_s19, 1024  ;;  %s947_s16 = smov [#allocation4]  }
  0x2d   : > { %p832_p10 = scmp.ne.s32.totalorder %s183_s19, %s831_s15  ;;  %s836_s7 = sshll.u32 %s947_s16, 4  ;;  %s837_s7 = int_to_ptr.vmem [resolvable:$false] %s836_s7 }
  0x2e   : > { %s838_s17 = scalar_lea.vmem %s837_s7, 2048  ;;  %p839_p8 = scmp.lt.s32.totalorder %s183_s19, %s837_s7 }
  0x2f   : > { %p834_p11 = pnand %p832_p10, %p820_p9  ;;  %p840_p1 = scmp.lt.s32.totalorder %s838_s17, %s831_s15 }
  0x31   : > { %p835_p12 = pneg %p834_p11  ;;  %p841_p2 = por %p840_p1, %p839_p8 }
  0x33   : > { %p842_p4 = pnand %p841_p2, %p835_p12 }
  0x35   : > { %845 = shalt.err (!%p842_p4)
}
  0x36   : > { %731 = dma.hbm_to_vmem [thread:$0]  (!%p1063_p5), %s180_s30, 1024, %s183_s19, %s169_s5  }
  0x37   : > { %p206_p3 = pnand %p709_p6, %p205_p7 }
  0x38   : > { %s1081_s13 = sand.u32 (!%p206_p3), 1, %s920_s0  }
  0x39   : > { %209 = sbr.rel (%p206_p3) target bundleno = 289 (0x121), region = 32  ;;  %s710_s18 = sshll.u32 (!%p206_p3), %s1081_s13, 6 }
  0x3a   : > { %s212_s27 = scalar_lea.sflag (!%p206_p3), [#allocation5], %s1081_s13  ;;  %s1087_s28 = scalar_lea.vmem (!%p206_p3), [#allocation4], %s710_s18 }
  0x3e   : > { %907 = dma.done.wait (%p1040_p13), %s212_s27, 1024  }
  0x3f   : > { %909 = vsyncadd (%p1040_p13), %s212_s27, 4294966272  ;;  %v948_v0 = vmov 0.0   ;;  %s249_s30 = sld [smem:[#allocation3 + %s928_s22]]  ;;  %v949_v1 = vmov 0   ;;  %v263_v2 = vld [vmem:[%s1087_s28 + $0x8] sm:$0xff]  ;;  %v265_v3 = vld [vmem:[%s1087_s28 + $0x18] sm:$0xff] }
  0x40   : > { %345 = vmatprep.mubr.f32.mxu0 %v948_v0  ;;  %416 = vmatprep.mubr.f32.mxu1 %v948_v0  ;;  %s255_s19 = sld [smem:[#allocation3 + %s928_s22]]  ;;  %v262_v4 = vld [vmem:[%s1087_s28] sm:$0xff]  ;;  %v264_v5 = vld [vmem:[%s1087_s28 + $0x10] sm:$0xff]  ;;  %v267_v6 = vld [vmem:[%s1087_s28 + $0x28] sm:$0xff]  ;;  %vm277_vm0 = vcmask 64512   ;;  %s719_s17 = sshll.u32 %s928_s22, 3 }
  0x41   : > { %805 = vset.pattern.permute.xlu0 %v949_v1  ;;  %311 = vmatprep.subr.mxu0 %v263_v2  ;;  %v269_v7 = vld [vmem:[%s1087_s28 + $0x38] sm:$0xff]  ;;  %v266_v8 = vld [vmem:[%s1087_s28 + $0x20] sm:$0xff]  ;;  %v268_v9 = vld [vmem:[%s1087_s28 + $0x30] sm:$0xff]  ;;  %s720_s27 = sshll.u32 %s932_s23, 5  ;;  %s574_s6 = scalar_lea.sflag [#allocation6], %s1081_s13 }
  0x42   : > { %382 = vmatprep.subr.mxu1 %v265_v3  ;;  %312 = vmatpush1.msra.mxu0 %v262_v4  ;;  %s586_s28 = sadd.s32 %s720_s27, %s719_s17 }
  0x43   : > { %383 = vmatpush1.msra.mxu1 %v264_v5  ;;  %453 = vmatprep.subr.mxu0 %v267_v6 }
  0x44   : > { %524 = vmatprep.subr.mxu1 %v269_v7 }
  0x45   : > { %p250_p3 = scmp.lt.s32.totalorder %s249_s30, 3 }
  0x46   : > { %p256_p13 = scmp.lt.s32.totalorder %s255_s19, 3 }
  0x47   : > { %s1195_s30 = smov (!%p250_p3, %s249_s30), 3 }
  0x48   : > { %s1197_s19 = smov (!%p256_p13, %s255_s19), 3  ;;  %s712_s8 = sshll.u32 %s1195_s30, 3 }
  0x49   : > { %s253_s11 = scalar_lea.vmem %s1169_s2, %s712_s8  ;;  %s713_s5 = sshll.u32 %s1197_s19, 3 }
  0x4a   : > { %v270_v10 = vld [vmem:[%s253_s11] sm:$0xff]  ;;  %s259_s7 = scalar_lea.vmem %s1170_s3, %s713_s5  ;;  %s247_s30 = scalar_lea.vmem [#allocation7], %s710_s18 }
  0x4b   : > { %714 = vmatmul.mubr.msk.f32.vlgmr.msra.gmra.mxu0 %vm277_vm0, %v270_v10  ;;  %715 = vmatmul.mubr.msk.f32.vlgmr.msra.gmra.mxu1 %vm277_vm0, %v270_v10  ;;  %v271_v11 = vld [vmem:[%s259_s7] sm:$0xff]  ;;  %s721_s19 = sshll.u32 %s586_s28, 7  ;;  %s590_s8 = sshll.u32 %s247_s30, 4  ;;  %s591_s8 = int_to_ptr.vmem [resolvable:$true] %s590_s8 }
  0x4c   : > { %454 = vmatpush1.msra.mxu0 %v266_v8  ;;  %525 = vmatpush1.msra.mxu1 %v268_v9  ;;  %s1120_s18 = scalar_lea.hbm %s1171_s4, %s721_s19  ;;  %s846_s10 = scalar_lea.vmem %s591_s8, 1024 }
  0x4d   : > { %487 = vmatprep.mubr.f32.mxu0 %v948_v0  ;;  %558 = vmatprep.mubr.f32.mxu1 %v948_v0  ;;  %p847_p5 = scmp.ne.s32.totalorder %s591_s8, %s846_s10  ;;  %s950_s11 = smov [#allocation7]  }
  0x4e   : > { %274 = vperm.xlu0 %805, %v271_v11   ;;  %s850_s5 = sshll.u32 %s950_s11, 4  ;;  %s851_s5 = int_to_ptr.vmem [resolvable:$false] %s850_s5 }
  0x4f   : > { %716 = vmatmul.mubr.msk.f32.vlgmr.msra.gmra.mxu0 %vm277_vm0, %v270_v10  ;;  %717 = vmatmul.mubr.msk.f32.vlgmr.msra.gmra.mxu1 %vm277_vm0, %v270_v10  ;;  %p848_p6 = pnand %p847_p5, %p1044_p0  ;;  %s852_s15 = scalar_lea.vmem %s851_s5, 2048 }
  0x50   : > { %p853_p9 = scmp.lt.s32.totalorder %s591_s8, %s851_s5  ;;  %p854_p10 = scmp.lt.s32.totalorder %s852_s15, %s846_s10 }
  0x51   : > { %p849_p7 = pneg %p848_p6 }
  0x52   : > { %p855_p11 = por %p854_p10, %p853_p9 }
  0x54   : > { %p856_p12 = pnand %p855_p11, %p849_p7 }
  0xc9   : > { %v275_v12 = vpop.permute.xlu0 %274 }
 0x10b   : > { %v347_v13 = vpop.f32.mrf.mxu0  ;;  %v418_v14 = vpop.f32.mrf.mxu1 }
 0x10c   : > { %v348_v15 = vadd.f32 %v347_v13, %v275_v12  ;;  %v419_v16 = vadd.f32 %v418_v14, %v275_v12 }
 0x10d   : > { %v349_v17 = vpop.f32.mrf.mxu0  ;;  %v420_v18 = vpop.f32.mrf.mxu1 }
 0x10e   : > { %565 = vst [vmem:[%s247_s30] sm:$0xff] %v348_v15  ;;  %567 = vst [vmem:[%s247_s30 + $0x10] sm:$0xff] %v419_v16  ;;  %v350_v19 = vadd.f32 %v349_v17, %v275_v12  ;;  %v421_v20 = vadd.f32 %v420_v18, %v275_v12 }
 0x10f   : > { %v489_v21 = vpop.f32.mrf.mxu0  ;;  %v560_v22 = vpop.f32.mrf.mxu1 }
 0x110   : > { %566 = vst [vmem:[%s247_s30 + $0x8] sm:$0xff] %v350_v19  ;;  %568 = vst [vmem:[%s247_s30 + $0x18] sm:$0xff] %v421_v20  ;;  %v490_v23 = vadd.f32 %v489_v21, %v275_v12  ;;  %v561_v24 = vadd.f32 %v560_v22, %v275_v12 }
 0x111   : > { %v491_v25 = vpop.f32.mrf.mxu0  ;;  %v562_v26 = vpop.f32.mrf.mxu1 }
 0x112   : > { %569 = vst [vmem:[%s247_s30 + $0x20] sm:$0xff] %v490_v23  ;;  %571 = vst [vmem:[%s247_s30 + $0x30] sm:$0xff] %v561_v24  ;;  %v492_v27 = vadd.f32 %v491_v25, %v275_v12  ;;  %v563_v28 = vadd.f32 %v562_v26, %v275_v12 }
 0x114   : > { %570 = vst [vmem:[%s247_s30 + $0x28] sm:$0xff] %v492_v27  ;;  %572 = vst [vmem:[%s247_s30 + $0x38] sm:$0xff] %v563_v28 }
 0x115   : > { %859 = shalt.err (!%p856_p12)
}
 0x116   : > { %s860_s16 = scalar_lea.hbm %s1120_s18, 1024  ;;  %s864_s17 = scalar_lea.hbm %s1171_s4, 8192 }
 0x117   : > { %p861_p8 = scmp.ne.s32.totalorder %s1120_s18, %s860_s16  ;;  %p865_p4 = scmp.lt.s32.totalorder %s1120_s18, %s1171_s4 }
 0x118   : > { %p866_p3 = scmp.lt.s32.totalorder %s864_s17, %s860_s16 }
 0x119   : > { %p862_p1 = pnand %p861_p8, %p1044_p0 }
 0x11a   : > { %p867_p13 = por %p866_p3, %p865_p4 }
 0x11b   : > { %p863_p2 = pneg %p862_p1 }
 0x11d   : > { %p868_p5 = pnand %p867_p13, %p863_p2 }
 0x11f   : > { %871 = shalt.err (!%p868_p5)
}
 0x120   : > { %726 = dma.vmem_to_hbm [thread:$0]  (%p1044_p0), %s591_s8, 1024, %s1120_s18, %s574_s6  }
 0x121 PF: > { %p737_p6 = scmp.ge.s32.totalorder %s944_s26, 2  ;;  %s602_s30 = sand.u32 1, %s916_s20  }
 0x122   : > { %p1179_p7 = scmp.ne.s32.totalorder %s1177_s12, 0  ;;  %s603_s19 = scalar_lea.sflag [#allocation6], %s602_s30 }
 0x124   : > { %p733_p9 = pnand %p737_p6, %p1179_p7 }
 0x126   : > { %p734_p10 = pneg %p733_p9 }
 0x128   : > { %911 = dma.done.wait (%p734_p10), %s603_s19, 1024  }
 0x129   : > { %913 = vsyncadd (%p734_p10), %s603_s19, 4294966272  ;;  %s26_s26 = sadd.s32 1, %s944_s26   ;;  %s1180_s9 = sld [smem:[#allocation11_spill]] }
 0x12a   : > { %p23_p11 = scmp.ge.s32.totalorder %s26_s26, 10   ;;  %s1181_s20 = smov %s920_s0 }
 0x12b   : > { %s1182_s0 = smov %s924_s21  ;;  %s1183_s21 = smov %s1057_s14 }
 0x12c   : > { %s1184_s22 = smov %s936_s24  ;;  %s1185_s23 = smov %s940_s25 }
 0x12d   : > { %s1186_s24 = smov %s1189_s29  ;;  %25 = sbr.rel (!%p23_p11) target bundleno = 22 (0x16), region = 83 }
 0x12f   : > { %s1187_s25 = smov %s1180_s9 }
 0x132   :  { %608 = vsyncpa [#allocation5], 1 }
 0x133   :  { %610 = vsyncpa [#allocation5 + $0x1], 1 }
 0x134   :  { %611 = vsyncpa [#allocation6], 1 }
 0x135   :  { %613 = vsyncpa [#allocation6 + $0x1], 1 }

</bundles_post_ra>
